<compile_context>
chip_gen: v7x
topology: tpu7x:2x2x1
jax: 0.10.0
libtpu: 0.0.40
codegen_flags: <defaults>
</compile_context>

<pallas_src>
import math

import jax
import jax.numpy as jnp
import numpy as np
from jax.experimental import pallas as pl
from jax.experimental.pallas import tpu as pltpu

# ----------------------------- config (small synthetic shapes) -----------------------------
B = 2            # batch
S = 8            # sequence length
H = 32           # hidden size
NH = 4           # attention heads
DH = H // NH     # head size
F = 64           # ffn hidden size
LN_EPS = 1e-5


# ----------------------------- math helpers (usable in- and out-of-kernel) -----------------------------
def _layernorm(x, gamma, beta):
    mean = jnp.mean(x, axis=-1, keepdims=True)
    var = jnp.mean((x - mean) ** 2, axis=-1, keepdims=True)
    return (x - mean) * jax.lax.rsqrt(var + LN_EPS) * gamma + beta


def _gelu(x):
    # tanh approximation, exactly as in the PyTorch reference `gelu`
    return 0.5 * x * (1.0 + jnp.tanh(math.sqrt(2.0 / math.pi) * (x + 0.044715 * x ** 3)))


# ----------------------------- fused transformer-block kernel (one batch element per step) ---------
def bert_block_kernel(h_ref, mask_ref,
                      wqkv_ref, bqkv_ref, wo_ref, bo_ref, ln1g_ref, ln1b_ref,
                      w1_ref, b1_ref, w2_ref, b2_ref, ln2g_ref, ln2b_ref,
                      out_ref, attn_out_ref, score_ref):
    h = h_ref[0]                                  # (S, H) f32
    mask_add = mask_ref[0]                        # (1, S) f32 additive mask (already * -10000)
    h_bf = h.astype(jnp.bfloat16)

    # ---- fused QKV projection: one full-width MXU matmul, bf16 operands, f32 accumulation ----
    qkv = jnp.dot(h_bf, wqkv_ref[...],
                  preferred_element_type=jnp.float32) + bqkv_ref[...]    # (S, 3H) f32

    # ---- per-head attention core (score matmuls are inherently head-batched) ----
    scale = 1.0 / math.sqrt(DH)
    scores, ctxs = [], []
    for n in range(NH):                           # static, unrolled at trace time
        qn = qkv[:, n * DH:(n + 1) * DH]                      # (S, DH) f32
        kn = qkv[:, H + n * DH:H + (n + 1) * DH]              # (S, DH) f32
        vn = qkv[:, 2 * H + n * DH:2 * H + (n + 1) * DH]      # (S, DH) f32
        # keep QK^T in f32: attn_score is a returned tensor compared element-wise
        sn = jnp.einsum("qd,kd->qk", qn, kn,
                        preferred_element_type=jnp.float32) * scale + mask_add  # (S, S)
        scores.append(sn)
        # softmax over keys (f32); exact reciprocal for parity with torch softmax
        en = jnp.exp(sn - jnp.max(sn, axis=-1, keepdims=True))
        pn = en * pl.reciprocal(jnp.sum(en, axis=-1, keepdims=True), approx=False)
        # TODO(synk): attention-prob dropout omitted (identity at inference).
        ctxs.append(jnp.dot(pn.astype(jnp.bfloat16), vn.astype(jnp.bfloat16),
                            preferred_element_type=jnp.float32))        # (S, DH) f32
    score_ref[...] = jnp.stack(scores, axis=0)[None]          # (1, NH, S, S) masked logits

    # ---- output projection as concat(heads) @ Wo : one (S,H)@(H,H) matmul ----
    ctx = jnp.concatenate(ctxs, axis=-1)                       # (S, H) f32
    proj = jnp.dot(ctx.astype(jnp.bfloat16), wo_ref[...],
                   preferred_element_type=jnp.float32) + bo_ref[...]
    # TODO(synk): hidden dropout omitted (identity at inference).
    attn_out = _layernorm(h + proj, ln1g_ref[...], ln1b_ref[...])        # (S, H) f32
    attn_out_ref[...] = attn_out[None]

    # ---- feed-forward network: bf16 MXU matmuls, f32 gelu/LN/residual ----
    y = jnp.dot(attn_out.astype(jnp.bfloat16), w1_ref[...],
                preferred_element_type=jnp.float32) + b1_ref[...]        # (S, F)
    y = _gelu(y)
    y = jnp.dot(y.astype(jnp.bfloat16), w2_ref[...],
                preferred_element_type=jnp.float32) + b2_ref[...]        # (S, H)
    # TODO(synk): ffn dropout omitted (identity at inference).
    out = _layernorm(attn_out + y, ln2g_ref[...], ln2b_ref[...])
    out_ref[...] = out[None]


# ----------------------------- wrapper (layout plumbing + pallas_call) -----------------------------
def bert_transformer_block(params, hidden_states, attn_mask):
    f32, bf16 = jnp.float32, jnp.bfloat16

    # fused QKV weight / bias (built once outside the kernel); matmul weights in bf16
    wqkv = jnp.concatenate([params["wq"], params["wk"], params["wv"]], axis=1).astype(bf16)  # (H, 3H)
    bqkv = jnp.concatenate([params["bq"], params["bk"], params["bv"]]).reshape(1, 3 * H).astype(f32)
    wo = params["wo"].astype(bf16)
    w1 = params["w1"].astype(bf16)
    w2 = params["w2"].astype(bf16)
    # additive attention mask, precomputed once: (B, 1, S)
    mask_add = (attn_mask.astype(f32) * -10000.0)[:, None, :]

    def weight_spec(shape):
        return pl.BlockSpec(shape, lambda b: (0,) * len(shape))   # resident across the grid

    out, attn_out, attn_score = pl.pallas_call(
        bert_block_kernel,
        grid=(B,),
        in_specs=[
            pl.BlockSpec((1, S, H), lambda b: (b, 0, 0)),          # hidden_states
            pl.BlockSpec((1, 1, S), lambda b: (b, 0, 0)),          # additive mask
            weight_spec((H, 3 * H)),                               # fused QKV weight (bf16)
            weight_spec((1, 3 * H)),                               # fused QKV bias   (f32)
            weight_spec((H, H)),                                   # Wo (bf16)
            weight_spec((1, H)),                                   # bo
            weight_spec((1, H)), weight_spec((1, H)),              # ln1 gamma / beta
            weight_spec((H, F)), weight_spec((1, F)),              # W1 (bf16), b1
            weight_spec((F, H)), weight_spec((1, H)),              # W2 (bf16), b2
            weight_spec((1, H)), weight_spec((1, H)),              # ln2 gamma / beta
        ],
        out_specs=[
            pl.BlockSpec((1, S, H), lambda b: (b, 0, 0)),          # ffn output
            pl.BlockSpec((1, S, H), lambda b: (b, 0, 0)),          # attention output
            pl.BlockSpec((1, NH, S, S), lambda b: (b, 0, 0, 0)),   # attention scores
        ],
        out_shape=(jax.ShapeDtypeStruct((B, S, H), f32),
                   jax.ShapeDtypeStruct((B, S, H), f32),
                   jax.ShapeDtypeStruct((B, NH, S, S), f32)),
        compiler_params=pltpu.CompilerParams(
            dimension_semantics=("parallel",)),     # batch steps are independent (v7x: 2 TCs)
    )(hidden_states, mask_add,
      wqkv, bqkv, wo,
      params["bo"].reshape(1, H),
      params["ln1_g"].reshape(1, H), params["ln1_b"].reshape(1, H),
      w1, params["b1"].reshape(1, F),
      w2, params["b2"].reshape(1, H),
      params["ln2_g"].reshape(1, H), params["ln2_b"].reshape(1, H))
    return out, attn_out, attn_score


forward = jax.jit(bert_transformer_block)


# ----------------------------- pure-JAX reference (for a sanity check) -----------------------------
def bert_block_reference(p, hidden, mask):
    q = hidden @ p["wq"] + p["bq"]
    k = hidden @ p["wk"] + p["bk"]
    v = hidden @ p["wv"] + p["bv"]

    def split(x):
        return x.reshape(B, S, NH, DH).transpose(0, 2, 1, 3)

    qh, kh, vh = split(q), split(k), split(v)
    score = jnp.einsum("bnqd,bnkd->bnqk", qh, kh) / math.sqrt(DH)
    score = score + (mask.astype(jnp.float32) * -10000.0)[:, None, None, :]
    prob = jax.nn.softmax(score, axis=-1)
    ctx = jnp.einsum("bnqk,bnkd->bnqd", prob, vh)
    ctx = ctx.transpose(0, 2, 1, 3).reshape(B, S, H)
    attn_out = _layernorm(hidden + ctx @ p["wo"] + p["bo"], p["ln1_g"], p["ln1_b"])
    y = _gelu(attn_out @ p["w1"] + p["b1"]) @ p["w2"] + p["b2"]
    out = _layernorm(attn_out + y, p["ln2_g"], p["ln2_b"])
    return out, attn_out, score


# ----------------------------- deterministic synthetic parameters -----------------------------
def init_params(key):
    ks = jax.random.split(key, 16)
    sd = 0.05
    n = lambda i, shape: sd * jax.random.normal(ks[i], shape, jnp.float32)
    return {
        "wq": n(0, (H, H)), "bq": n(1, (H,)),
        "wk": n(2, (H, H)), "bk": n(3, (H,)),
        "wv": n(4, (H, H)), "bv": n(5, (H,)),
        "wo": n(6, (H, H)), "bo": n(7, (H,)),
        "ln1_g": 1.0 + n(8, (H,)), "ln1_b": n(9, (H,)),
        "w1": n(10, (H, F)), "b1": n(11, (F,)),
        "w2": n(12, (F, H)), "b2": n(13, (H,)),
        "ln2_g": 1.0 + n(14, (H,)), "ln2_b": n(15, (H,)),
    }


# ----------------------------- main -----------------------------
if __name__ == "__main__":
    key = jax.random.PRNGKey(0)
    pkey, hkey = jax.random.split(key)

    params = init_params(pkey)
    hidden_states = jax.random.normal(hkey, (B, S, H), jnp.float32)
    # attn_mask: 1.0 marks padded key positions (added as -10000 to scores), 0.0 is valid.
    attn_mask = jnp.zeros((B, S), jnp.float32).at[:, S - 2:].set(1.0)

    out, attn_out, attn_score = jax.block_until_ready(
        forward(params, hidden_states, attn_mask))

    assert out.shape == (B, S, H)
    assert attn_out.shape == (B, S, H)
    assert attn_score.shape == (B, NH, S, S)

    ref_out, ref_attn_out, ref_score = bert_block_reference(params, hidden_states, attn_mask)
    np.testing.assert_allclose(np.asarray(attn_score), np.asarray(ref_score), rtol=2e-2, atol=2e-2)
    np.testing.assert_allclose(np.asarray(attn_out), np.asarray(ref_attn_out), rtol=2e-2, atol=2e-2)
    np.testing.assert_allclose(np.asarray(out), np.asarray(ref_out), rtol=2e-2, atol=2e-2)

    print("KERNEL_OK")
</pallas_src>

<mosaic_0001>
module attributes {stable_mosaic.version = 11 : i64} {
  func.func @bert_block_kernel(%arg0: i32, %arg1: memref<1x8x32xf32, #tpu.memory_space<vmem>>, %arg2: memref<1x1x8xf32, #tpu.memory_space<vmem>>, %arg3: memref<32x96xbf16, #tpu.memory_space<vmem>>, %arg4: memref<1x96xf32, #tpu.memory_space<vmem>>, %arg5: memref<32x32xbf16, #tpu.memory_space<vmem>>, %arg6: memref<1x32xf32, #tpu.memory_space<vmem>>, %arg7: memref<1x32xf32, #tpu.memory_space<vmem>>, %arg8: memref<1x32xf32, #tpu.memory_space<vmem>>, %arg9: memref<32x64xbf16, #tpu.memory_space<vmem>>, %arg10: memref<1x64xf32, #tpu.memory_space<vmem>>, %arg11: memref<64x32xbf16, #tpu.memory_space<vmem>>, %arg12: memref<1x32xf32, #tpu.memory_space<vmem>>, %arg13: memref<1x32xf32, #tpu.memory_space<vmem>>, %arg14: memref<1x32xf32, #tpu.memory_space<vmem>>, %arg15: memref<1x8x32xf32, #tpu.memory_space<vmem>>, %arg16: memref<1x8x32xf32, #tpu.memory_space<vmem>>, %arg17: memref<1x4x8x8xf32, #tpu.memory_space<vmem>>) attributes {dimension_semantics = [#tpu.dimension_semantics<parallel>], iteration_bounds = array<i64: 2>, scalar_prefetch = 0 : i64, scratch_operands = 0 : i64, tpu.core_type = #tpu.core_type<tc>, window_params = [{transform_indices = @transform_0, window_bounds = array<i64: 1, 8, 32>}, {transform_indices = @transform_1, window_bounds = array<i64: 1, 1, 8>}, {pipeline_mode = #tpu.pipeline_mode<synchronous>, transform_indices = @transform_2, window_bounds = array<i64: 32, 96>}, {pipeline_mode = #tpu.pipeline_mode<synchronous>, transform_indices = @transform_3, window_bounds = array<i64: 1, 96>}, {pipeline_mode = #tpu.pipeline_mode<synchronous>, transform_indices = @transform_4, window_bounds = array<i64: 32, 32>}, {pipeline_mode = #tpu.pipeline_mode<synchronous>, transform_indices = @transform_5, window_bounds = array<i64: 1, 32>}, {pipeline_mode = #tpu.pipeline_mode<synchronous>, transform_indices = @transform_6, window_bounds = array<i64: 1, 32>}, {pipeline_mode = #tpu.pipeline_mode<synchronous>, transform_indices = @transform_7, window_bounds = array<i64: 1, 32>}, {pipeline_mode = #tpu.pipeline_mode<synchronous>, transform_indices = @transform_8, window_bounds = array<i64: 32, 64>}, {pipeline_mode = #tpu.pipeline_mode<synchronous>, transform_indices = @transform_9, window_bounds = array<i64: 1, 64>}, {pipeline_mode = #tpu.pipeline_mode<synchronous>, transform_indices = @transform_10, window_bounds = array<i64: 64, 32>}, {pipeline_mode = #tpu.pipeline_mode<synchronous>, transform_indices = @transform_11, window_bounds = array<i64: 1, 32>}, {pipeline_mode = #tpu.pipeline_mode<synchronous>, transform_indices = @transform_12, window_bounds = array<i64: 1, 32>}, {pipeline_mode = #tpu.pipeline_mode<synchronous>, transform_indices = @transform_13, window_bounds = array<i64: 1, 32>}, {transform_indices = @transform_14, window_bounds = array<i64: 1, 8, 32>}, {transform_indices = @transform_15, window_bounds = array<i64: 1, 8, 32>}, {transform_indices = @transform_16, window_bounds = array<i64: 1, 4, 8, 8>}]} {
    %c0 = arith.constant 0 : index
    %c0_0 = arith.constant 0 : index
    %c0_1 = arith.constant 0 : index
    %0 = vector.load %arg1[%c0, %c0_0, %c0_1] : memref<1x8x32xf32, #tpu.memory_space<vmem>>, vector<1x8x32xf32>
    %1 = vector.shape_cast %0 : vector<1x8x32xf32> to vector<8x32xf32>
    %c0_2 = arith.constant 0 : index
    %c0_3 = arith.constant 0 : index
    %c0_4 = arith.constant 0 : index
    %2 = vector.load %arg2[%c0_2, %c0_3, %c0_4] : memref<1x1x8xf32, #tpu.memory_space<vmem>>, vector<1x1x8xf32>
    %3 = vector.shape_cast %2 : vector<1x1x8xf32> to vector<1x8xf32>
    %4 = arith.truncf %1 : vector<8x32xf32> to vector<8x32xbf16>
    %c0_5 = arith.constant 0 : index
    %c0_6 = arith.constant 0 : index
    %5 = vector.load %arg3[%c0_5, %c0_6] : memref<32x96xbf16, #tpu.memory_space<vmem>>, vector<32x96xbf16>
    %cst = arith.constant dense<0.000000e+00> : vector<8x96xf32>
    %6 = tpu.matmul %4, %5, %cst {dimension_numbers = #tpu.dot_dimension_numbers<[1], [0], [0], [1], [0, 0, 1, 1], [], []>} : vector<8x32xbf16>, vector<32x96xbf16>, vector<8x96xf32> -> vector<8x96xf32>
    %c0_7 = arith.constant 0 : index
    %c0_8 = arith.constant 0 : index
    %7 = vector.load %arg4[%c0_7, %c0_8] : memref<1x96xf32, #tpu.memory_space<vmem>>, vector<1x96xf32>
    %8 = vector.broadcast %7 : vector<1x96xf32> to vector<8x96xf32>
    %9 = arith.addf %6, %8 : vector<8x96xf32>
    %10 = vector.extract_strided_slice %9 {offsets = [0, 0], sizes = [8, 8], strides = [1, 1]} : vector<8x96xf32> to vector<8x8xf32>
    %11 = vector.extract_strided_slice %9 {offsets = [0, 32], sizes = [8, 8], strides = [1, 1]} : vector<8x96xf32> to vector<8x8xf32>
    %12 = vector.extract_strided_slice %9 {offsets = [0, 64], sizes = [8, 8], strides = [1, 1]} : vector<8x96xf32> to vector<8x8xf32>
    "tpu.trace_start"() <{level = 10 : i32, message = "qd,kd->qk"}> : () -> ()
    %cst_9 = arith.constant dense<0.000000e+00> : vector<8x8xf32>
    %13 = tpu.matmul %10, %11, %cst_9 {dimension_numbers = #tpu.dot_dimension_numbers<[1], [1], [0], [0], [0, 0, 1, 0], [], []>} : vector<8x8xf32>, vector<8x8xf32>, vector<8x8xf32> -> vector<8x8xf32>
    "tpu.trace_stop"() : () -> ()
    %cst_10 = arith.constant 0.353553385 : f32
    %14 = vector.broadcast %cst_10 : f32 to vector<8x8xf32>
    %15 = arith.mulf %13, %14 : vector<8x8xf32>
    %16 = vector.broadcast %3 : vector<1x8xf32> to vector<8x8xf32>
    %17 = arith.addf %15, %16 : vector<8x8xf32>
    %cst_11 = arith.constant dense<0xFF800000> : vector<8xf32>
    %18 = vector.multi_reduction <maximumf>, %17, %cst_11 [1] : vector<8x8xf32> to vector<8xf32>
    %19 = vector.shape_cast %18 : vector<8xf32> to vector<8x1xf32>
    %20 = vector.broadcast %19 : vector<8x1xf32> to vector<8x8xf32>
    %21 = arith.subf %17, %20 : vector<8x8xf32>
    %22 = math.exp %21 : vector<8x8xf32>
    %cst_12 = arith.constant dense<0.000000e+00> : vector<8xf32>
    %23 = vector.multi_reduction <add>, %22, %cst_12 [1] : vector<8x8xf32> to vector<8xf32>
    %24 = vector.shape_cast %23 : vector<8xf32> to vector<8x1xf32>
    %25 = tpu.reciprocal %24 : vector<8x1xf32> -> vector<8x1xf32>
    %26 = vector.broadcast %25 : vector<8x1xf32> to vector<8x8xf32>
    %27 = arith.mulf %22, %26 : vector<8x8xf32>
    %28 = arith.truncf %27 : vector<8x8xf32> to vector<8x8xbf16>
    %29 = arith.truncf %12 : vector<8x8xf32> to vector<8x8xbf16>
    %cst_13 = arith.constant dense<0.000000e+00> : vector<8x8xf32>
    %30 = tpu.matmul %28, %29, %cst_13 {dimension_numbers = #tpu.dot_dimension_numbers<[1], [0], [0], [1], [0, 0, 1, 1], [], []>} : vector<8x8xbf16>, vector<8x8xbf16>, vector<8x8xf32> -> vector<8x8xf32>
    %31 = vector.extract_strided_slice %9 {offsets = [0, 8], sizes = [8, 8], strides = [1, 1]} : vector<8x96xf32> to vector<8x8xf32>
    %32 = vector.extract_strided_slice %9 {offsets = [0, 40], sizes = [8, 8], strides = [1, 1]} : vector<8x96xf32> to vector<8x8xf32>
    %33 = vector.extract_strided_slice %9 {offsets = [0, 72], sizes = [8, 8], strides = [1, 1]} : vector<8x96xf32> to vector<8x8xf32>
    "tpu.trace_start"() <{level = 10 : i32, message = "qd,kd->qk"}> : () -> ()
    %cst_14 = arith.constant dense<0.000000e+00> : vector<8x8xf32>
    %34 = tpu.matmul %31, %32, %cst_14 {dimension_numbers = #tpu.dot_dimension_numbers<[1], [1], [0], [0], [0, 0, 1, 0], [], []>} : vector<8x8xf32>, vector<8x8xf32>, vector<8x8xf32> -> vector<8x8xf32>
    "tpu.trace_stop"() : () -> ()
    %cst_15 = arith.constant 0.353553385 : f32
    %35 = vector.broadcast %cst_15 : f32 to vector<8x8xf32>
    %36 = arith.mulf %34, %35 : vector<8x8xf32>
    %37 = vector.broadcast %3 : vector<1x8xf32> to vector<8x8xf32>
    %38 = arith.addf %36, %37 : vector<8x8xf32>
    %cst_16 = arith.constant dense<0xFF800000> : vector<8xf32>
    %39 = vector.multi_reduction <maximumf>, %38, %cst_16 [1] : vector<8x8xf32> to vector<8xf32>
    %40 = vector.shape_cast %39 : vector<8xf32> to vector<8x1xf32>
    %41 = vector.broadcast %40 : vector<8x1xf32> to vector<8x8xf32>
    %42 = arith.subf %38, %41 : vector<8x8xf32>
    %43 = math.exp %42 : vector<8x8xf32>
    %cst_17 = arith.constant dense<0.000000e+00> : vector<8xf32>
    %44 = vector.multi_reduction <add>, %43, %cst_17 [1] : vector<8x8xf32> to vector<8xf32>
    %45 = vector.shape_cast %44 : vector<8xf32> to vector<8x1xf32>
    %46 = tpu.reciprocal %45 : vector<8x1xf32> -> vector<8x1xf32>
    %47 = vector.broadcast %46 : vector<8x1xf32> to vector<8x8xf32>
    %48 = arith.mulf %43, %47 : vector<8x8xf32>
    %49 = arith.truncf %48 : vector<8x8xf32> to vector<8x8xbf16>
    %50 = arith.truncf %33 : vector<8x8xf32> to vector<8x8xbf16>
    %cst_18 = arith.constant dense<0.000000e+00> : vector<8x8xf32>
    %51 = tpu.matmul %49, %50, %cst_18 {dimension_numbers = #tpu.dot_dimension_numbers<[1], [0], [0], [1], [0, 0, 1, 1], [], []>} : vector<8x8xbf16>, vector<8x8xbf16>, vector<8x8xf32> -> vector<8x8xf32>
    %52 = vector.extract_strided_slice %9 {offsets = [0, 16], sizes = [8, 8], strides = [1, 1]} : vector<8x96xf32> to vector<8x8xf32>
    %53 = vector.extract_strided_slice %9 {offsets = [0, 48], sizes = [8, 8], strides = [1, 1]} : vector<8x96xf32> to vector<8x8xf32>
    %54 = vector.extract_strided_slice %9 {offsets = [0, 80], sizes = [8, 8], strides = [1, 1]} : vector<8x96xf32> to vector<8x8xf32>
    "tpu.trace_start"() <{level = 10 : i32, message = "qd,kd->qk"}> : () -> ()
    %cst_19 = arith.constant dense<0.000000e+00> : vector<8x8xf32>
    %55 = tpu.matmul %52, %53, %cst_19 {dimension_numbers = #tpu.dot_dimension_numbers<[1], [1], [0], [0], [0, 0, 1, 0], [], []>} : vector<8x8xf32>, vector<8x8xf32>, vector<8x8xf32> -> vector<8x8xf32>
    "tpu.trace_stop"() : () -> ()
    %cst_20 = arith.constant 0.353553385 : f32
    %56 = vector.broadcast %cst_20 : f32 to vector<8x8xf32>
    %57 = arith.mulf %55, %56 : vector<8x8xf32>
    %58 = vector.broadcast %3 : vector<1x8xf32> to vector<8x8xf32>
    %59 = arith.addf %57, %58 : vector<8x8xf32>
    %cst_21 = arith.constant dense<0xFF800000> : vector<8xf32>
    %60 = vector.multi_reduction <maximumf>, %59, %cst_21 [1] : vector<8x8xf32> to vector<8xf32>
    %61 = vector.shape_cast %60 : vector<8xf32> to vector<8x1xf32>
    %62 = vector.broadcast %61 : vector<8x1xf32> to vector<8x8xf32>
    %63 = arith.subf %59, %62 : vector<8x8xf32>
    %64 = math.exp %63 : vector<8x8xf32>
    %cst_22 = arith.constant dense<0.000000e+00> : vector<8xf32>
    %65 = vector.multi_reduction <add>, %64, %cst_22 [1] : vector<8x8xf32> to vector<8xf32>
    %66 = vector.shape_cast %65 : vector<8xf32> to vector<8x1xf32>
    %67 = tpu.reciprocal %66 : vector<8x1xf32> -> vector<8x1xf32>
    %68 = vector.broadcast %67 : vector<8x1xf32> to vector<8x8xf32>
    %69 = arith.mulf %64, %68 : vector<8x8xf32>
    %70 = arith.truncf %69 : vector<8x8xf32> to vector<8x8xbf16>
    %71 = arith.truncf %54 : vector<8x8xf32> to vector<8x8xbf16>
    %cst_23 = arith.constant dense<0.000000e+00> : vector<8x8xf32>
    %72 = tpu.matmul %70, %71, %cst_23 {dimension_numbers = #tpu.dot_dimension_numbers<[1], [0], [0], [1], [0, 0, 1, 1], [], []>} : vector<8x8xbf16>, vector<8x8xbf16>, vector<8x8xf32> -> vector<8x8xf32>
    %73 = vector.extract_strided_slice %9 {offsets = [0, 24], sizes = [8, 8], strides = [1, 1]} : vector<8x96xf32> to vector<8x8xf32>
    %74 = vector.extract_strided_slice %9 {offsets = [0, 56], sizes = [8, 8], strides = [1, 1]} : vector<8x96xf32> to vector<8x8xf32>
    %75 = vector.extract_strided_slice %9 {offsets = [0, 88], sizes = [8, 8], strides = [1, 1]} : vector<8x96xf32> to vector<8x8xf32>
    "tpu.trace_start"() <{level = 10 : i32, message = "qd,kd->qk"}> : () -> ()
    %cst_24 = arith.constant dense<0.000000e+00> : vector<8x8xf32>
    %76 = tpu.matmul %73, %74, %cst_24 {dimension_numbers = #tpu.dot_dimension_numbers<[1], [1], [0], [0], [0, 0, 1, 0], [], []>} : vector<8x8xf32>, vector<8x8xf32>, vector<8x8xf32> -> vector<8x8xf32>
    "tpu.trace_stop"() : () -> ()
    %cst_25 = arith.constant 0.353553385 : f32
    %77 = vector.broadcast %cst_25 : f32 to vector<8x8xf32>
    %78 = arith.mulf %76, %77 : vector<8x8xf32>
    %79 = vector.broadcast %3 : vector<1x8xf32> to vector<8x8xf32>
    %80 = arith.addf %78, %79 : vector<8x8xf32>
    %cst_26 = arith.constant dense<0xFF800000> : vector<8xf32>
    %81 = vector.multi_reduction <maximumf>, %80, %cst_26 [1] : vector<8x8xf32> to vector<8xf32>
    %82 = vector.shape_cast %81 : vector<8xf32> to vector<8x1xf32>
    %83 = vector.broadcast %82 : vector<8x1xf32> to vector<8x8xf32>
    %84 = arith.subf %80, %83 : vector<8x8xf32>
    %85 = math.exp %84 : vector<8x8xf32>
    %cst_27 = arith.constant dense<0.000000e+00> : vector<8xf32>
    %86 = vector.multi_reduction <add>, %85, %cst_27 [1] : vector<8x8xf32> to vector<8xf32>
    %87 = vector.shape_cast %86 : vector<8xf32> to vector<8x1xf32>
    %88 = tpu.reciprocal %87 : vector<8x1xf32> -> vector<8x1xf32>
    %89 = vector.broadcast %88 : vector<8x1xf32> to vector<8x8xf32>
    %90 = arith.mulf %85, %89 : vector<8x8xf32>
    %91 = arith.truncf %90 : vector<8x8xf32> to vector<8x8xbf16>
    %92 = arith.truncf %75 : vector<8x8xf32> to vector<8x8xbf16>
    %cst_28 = arith.constant dense<0.000000e+00> : vector<8x8xf32>
    %93 = tpu.matmul %91, %92, %cst_28 {dimension_numbers = #tpu.dot_dimension_numbers<[1], [0], [0], [1], [0, 0, 1, 1], [], []>} : vector<8x8xbf16>, vector<8x8xbf16>, vector<8x8xf32> -> vector<8x8xf32>
    %94 = vector.shape_cast %17 : vector<8x8xf32> to vector<1x8x8xf32>
    %95 = vector.shape_cast %38 : vector<8x8xf32> to vector<1x8x8xf32>
    %96 = vector.shape_cast %59 : vector<8x8xf32> to vector<1x8x8xf32>
    %97 = vector.shape_cast %80 : vector<8x8xf32> to vector<1x8x8xf32>
    %98 = tpu.concatenate %94, %95, %96, %97 in 0 : vector<1x8x8xf32>, vector<1x8x8xf32>, vector<1x8x8xf32>, vector<1x8x8xf32> -> vector<4x8x8xf32>
    %99 = vector.shape_cast %98 : vector<4x8x8xf32> to vector<1x4x8x8xf32>
    %c0_29 = arith.constant 0 : index
    %c0_30 = arith.constant 0 : index
    %c0_31 = arith.constant 0 : index
    %c0_32 = arith.constant 0 : index
    %100 = vector.load %arg17[%c0_29, %c0_30, %c0_31, %c0_32] : memref<1x4x8x8xf32, #tpu.memory_space<vmem>>, vector<1x4x8x8xf32>
    tpu.vector_store %arg17[%c0_29, %c0_30, %c0_31, %c0_32], %99 {strides = array<i32>} : memref<1x4x8x8xf32, #tpu.memory_space<vmem>>, vector<1x4x8x8xf32>,
    %101 = tpu.concatenate %30, %51, %72, %93 in 1 : vector<8x8xf32>, vector<8x8xf32>, vector<8x8xf32>, vector<8x8xf32> -> vector<8x32xf32>
    %102 = arith.truncf %101 : vector<8x32xf32> to vector<8x32xbf16>
    %c0_33 = arith.constant 0 : index
    %c0_34 = arith.constant 0 : index
    %103 = vector.load %arg5[%c0_33, %c0_34] : memref<32x32xbf16, #tpu.memory_space<vmem>>, vector<32x32xbf16>
    %cst_35 = arith.constant dense<0.000000e+00> : vector<8x32xf32>
    %104 = tpu.matmul %102, %103, %cst_35 {dimension_numbers = #tpu.dot_dimension_numbers<[1], [0], [0], [1], [0, 0, 1, 1], [], []>} : vector<8x32xbf16>, vector<32x32xbf16>, vector<8x32xf32> -> vector<8x32xf32>
    %c0_36 = arith.constant 0 : index
    %c0_37 = arith.constant 0 : index
    %105 = vector.load %arg6[%c0_36, %c0_37] : memref<1x32xf32, #tpu.memory_space<vmem>>, vector<1x32xf32>
    %106 = vector.broadcast %105 : vector<1x32xf32> to vector<8x32xf32>
    %107 = arith.addf %104, %106 : vector<8x32xf32>
    %108 = arith.addf %1, %107 : vector<8x32xf32>
    %c0_38 = arith.constant 0 : index
    %c0_39 = arith.constant 0 : index
    %109 = vector.load %arg7[%c0_38, %c0_39] : memref<1x32xf32, #tpu.memory_space<vmem>>, vector<1x32xf32>
    %c0_40 = arith.constant 0 : index
    %c0_41 = arith.constant 0 : index
    %110 = vector.load %arg8[%c0_40, %c0_41] : memref<1x32xf32, #tpu.memory_space<vmem>>, vector<1x32xf32>
    %cst_42 = arith.constant dense<0.000000e+00> : vector<8xf32>
    %111 = vector.multi_reduction <add>, %108, %cst_42 [1] : vector<8x32xf32> to vector<8xf32>
    %112 = vector.shape_cast %111 : vector<8xf32> to vector<8x1xf32>
    %cst_43 = arith.constant 3.200000e+01 : f32
    %113 = vector.broadcast %cst_43 : f32 to vector<8x1xf32>
    %114 = arith.divf %112, %113 : vector<8x1xf32>
    %115 = vector.broadcast %114 : vector<8x1xf32> to vector<8x32xf32>
    %116 = arith.subf %108, %115 : vector<8x32xf32>
    %117 = arith.mulf %116, %116 : vector<8x32xf32>
    %cst_44 = arith.constant dense<0.000000e+00> : vector<8xf32>
    %118 = vector.multi_reduction <add>, %117, %cst_44 [1] : vector<8x32xf32> to vector<8xf32>
    %119 = vector.shape_cast %118 : vector<8xf32> to vector<8x1xf32>
    %cst_45 = arith.constant 3.200000e+01 : f32
    %120 = vector.broadcast %cst_45 : f32 to vector<8x1xf32>
    %121 = arith.divf %119, %120 : vector<8x1xf32>
    %122 = vector.broadcast %114 : vector<8x1xf32> to vector<8x32xf32>
    %123 = arith.subf %108, %122 : vector<8x32xf32>
    %cst_46 = arith.constant 9.99999974E-6 : f32
    %124 = vector.broadcast %cst_46 : f32 to vector<8x1xf32>
    %125 = arith.addf %121, %124 : vector<8x1xf32>
    %126 = math.rsqrt %125 : vector<8x1xf32>
    %127 = vector.broadcast %126 : vector<8x1xf32> to vector<8x32xf32>
    %128 = arith.mulf %123, %127 : vector<8x32xf32>
    %129 = vector.broadcast %109 : vector<1x32xf32> to vector<8x32xf32>
    %130 = arith.mulf %128, %129 : vector<8x32xf32>
    %131 = vector.broadcast %110 : vector<1x32xf32> to vector<8x32xf32>
    %132 = arith.addf %130, %131 : vector<8x32xf32>
    %133 = vector.shape_cast %132 : vector<8x32xf32> to vector<1x8x32xf32>
    %c0_47 = arith.constant 0 : index
    %c0_48 = arith.constant 0 : index
    %c0_49 = arith.constant 0 : index
    %134 = vector.load %arg16[%c0_47, %c0_48, %c0_49] : memref<1x8x32xf32, #tpu.memory_space<vmem>>, vector<1x8x32xf32>
    tpu.vector_store %arg16[%c0_47, %c0_48, %c0_49], %133 {strides = array<i32>} : memref<1x8x32xf32, #tpu.memory_space<vmem>>, vector<1x8x32xf32>,
    %135 = arith.truncf %132 : vector<8x32xf32> to vector<8x32xbf16>
    %c0_50 = arith.constant 0 : index
    %c0_51 = arith.constant 0 : index
    %136 = vector.load %arg9[%c0_50, %c0_51] : memref<32x64xbf16, #tpu.memory_space<vmem>>, vector<32x64xbf16>
    %cst_52 = arith.constant dense<0.000000e+00> : vector<8x64xf32>
    %137 = tpu.matmul %135, %136, %cst_52 {dimension_numbers = #tpu.dot_dimension_numbers<[1], [0], [0], [1], [0, 0, 1, 1], [], []>} : vector<8x32xbf16>, vector<32x64xbf16>, vector<8x64xf32> -> vector<8x64xf32>
    %c0_53 = arith.constant 0 : index
    %c0_54 = arith.constant 0 : index
    %138 = vector.load %arg10[%c0_53, %c0_54] : memref<1x64xf32, #tpu.memory_space<vmem>>, vector<1x64xf32>
    %139 = vector.broadcast %138 : vector<1x64xf32> to vector<8x64xf32>
    %140 = arith.addf %137, %139 : vector<8x64xf32>
    %cst_55 = arith.constant 5.000000e-01 : f32
    %141 = vector.broadcast %cst_55 : f32 to vector<8x64xf32>
    %142 = arith.mulf %141, %140 : vector<8x64xf32>
    %143 = arith.mulf %140, %140 : vector<8x64xf32>
    %144 = arith.mulf %140, %143 : vector<8x64xf32>
    %cst_56 = arith.constant 4.471500e-02 : f32
    %145 = vector.broadcast %cst_56 : f32 to vector<8x64xf32>
    %146 = arith.mulf %145, %144 : vector<8x64xf32>
    %147 = arith.addf %140, %146 : vector<8x64xf32>
    %cst_57 = arith.constant 0.797884583 : f32
    %148 = vector.broadcast %cst_57 : f32 to vector<8x64xf32>
    %149 = arith.mulf %148, %147 : vector<8x64xf32>
    %150 = math.tanh %149 : vector<8x64xf32>
    %cst_58 = arith.constant 1.000000e+00 : f32
    %151 = vector.broadcast %cst_58 : f32 to vector<8x64xf32>
    %152 = arith.addf %151, %150 : vector<8x64xf32>
    %153 = arith.mulf %142, %152 : vector<8x64xf32>
    %154 = arith.truncf %153 : vector<8x64xf32> to vector<8x64xbf16>
    %c0_59 = arith.constant 0 : index
    %c0_60 = arith.constant 0 : index
    %155 = vector.load %arg11[%c0_59, %c0_60] : memref<64x32xbf16, #tpu.memory_space<vmem>>, vector<64x32xbf16>
    %cst_61 = arith.constant dense<0.000000e+00> : vector<8x32xf32>
    %156 = tpu.matmul %154, %155, %cst_61 {dimension_numbers = #tpu.dot_dimension_numbers<[1], [0], [0], [1], [0, 0, 1, 1], [], []>} : vector<8x64xbf16>, vector<64x32xbf16>, vector<8x32xf32> -> vector<8x32xf32>
    %c0_62 = arith.constant 0 : index
    %c0_63 = arith.constant 0 : index
    %157 = vector.load %arg12[%c0_62, %c0_63] : memref<1x32xf32, #tpu.memory_space<vmem>>, vector<1x32xf32>
    %158 = vector.broadcast %157 : vector<1x32xf32> to vector<8x32xf32>
    %159 = arith.addf %156, %158 : vector<8x32xf32>
    %160 = arith.addf %132, %159 : vector<8x32xf32>
    %c0_64 = arith.constant 0 : index
    %c0_65 = arith.constant 0 : index
    %161 = vector.load %arg13[%c0_64, %c0_65] : memref<1x32xf32, #tpu.memory_space<vmem>>, vector<1x32xf32>
    %c0_66 = arith.constant 0 : index
    %c0_67 = arith.constant 0 : index
    %162 = vector.load %arg14[%c0_66, %c0_67] : memref<1x32xf32, #tpu.memory_space<vmem>>, vector<1x32xf32>
    %cst_68 = arith.constant dense<0.000000e+00> : vector<8xf32>
    %163 = vector.multi_reduction <add>, %160, %cst_68 [1] : vector<8x32xf32> to vector<8xf32>
    %164 = vector.shape_cast %163 : vector<8xf32> to vector<8x1xf32>
    %cst_69 = arith.constant 3.200000e+01 : f32
    %165 = vector.broadcast %cst_69 : f32 to vector<8x1xf32>
    %166 = arith.divf %164, %165 : vector<8x1xf32>
    %167 = vector.broadcast %166 : vector<8x1xf32> to vector<8x32xf32>
    %168 = arith.subf %160, %167 : vector<8x32xf32>
    %169 = arith.mulf %168, %168 : vector<8x32xf32>
    %cst_70 = arith.constant dense<0.000000e+00> : vector<8xf32>
    %170 = vector.multi_reduction <add>, %169, %cst_70 [1] : vector<8x32xf32> to vector<8xf32>
    %171 = vector.shape_cast %170 : vector<8xf32> to vector<8x1xf32>
    %cst_71 = arith.constant 3.200000e+01 : f32
    %172 = vector.broadcast %cst_71 : f32 to vector<8x1xf32>
    %173 = arith.divf %171, %172 : vector<8x1xf32>
    %174 = vector.broadcast %166 : vector<8x1xf32> to vector<8x32xf32>
    %175 = arith.subf %160, %174 : vector<8x32xf32>
    %cst_72 = arith.constant 9.99999974E-6 : f32
    %176 = vector.broadcast %cst_72 : f32 to vector<8x1xf32>
    %177 = arith.addf %173, %176 : vector<8x1xf32>
    %178 = math.rsqrt %177 : vector<8x1xf32>
    %179 = vector.broadcast %178 : vector<8x1xf32> to vector<8x32xf32>
    %180 = arith.mulf %175, %179 : vector<8x32xf32>
    %181 = vector.broadcast %161 : vector<1x32xf32> to vector<8x32xf32>
    %182 = arith.mulf %180, %181 : vector<8x32xf32>
    %183 = vector.broadcast %162 : vector<1x32xf32> to vector<8x32xf32>
    %184 = arith.addf %182, %183 : vector<8x32xf32>
    %185 = vector.shape_cast %184 : vector<8x32xf32> to vector<1x8x32xf32>
    %c0_73 = arith.constant 0 : index
    %c0_74 = arith.constant 0 : index
    %c0_75 = arith.constant 0 : index
    %186 = vector.load %arg15[%c0_73, %c0_74, %c0_75] : memref<1x8x32xf32, #tpu.memory_space<vmem>>, vector<1x8x32xf32>
    tpu.vector_store %arg15[%c0_73, %c0_74, %c0_75], %185 {strides = array<i32>} : memref<1x8x32xf32, #tpu.memory_space<vmem>>, vector<1x8x32xf32>,
    return
  }
  func.func @transform_0(%arg0: i32) -> (i32, i32, i32) {
    %c0_i32 = arith.constant 0 : i32
    %c0_i32_0 = arith.constant 0 : i32
    %c0_i32_1 = arith.constant 0 : i32
    return %arg0, %c0_i32, %c0_i32_0 : i32, i32, i32
  }
  func.func @transform_1(%arg0: i32) -> (i32, i32, i32) {
    %c0_i32 = arith.constant 0 : i32
    %c0_i32_0 = arith.constant 0 : i32
    %c0_i32_1 = arith.constant 0 : i32
    return %arg0, %c0_i32, %c0_i32_0 : i32, i32, i32
  }
  func.func @transform_2(%arg0: i32) -> (i32, i32) {
    %c0_i32 = arith.constant 0 : i32
    %c0_i32_0 = arith.constant 0 : i32
    %c0_i32_1 = arith.constant 0 : i32
    return %c0_i32, %c0_i32_0 : i32, i32
  }
  func.func @transform_3(%arg0: i32) -> (i32, i32) {
    %c0_i32 = arith.constant 0 : i32
    %c0_i32_0 = arith.constant 0 : i32
    %c0_i32_1 = arith.constant 0 : i32
    return %c0_i32, %c0_i32_0 : i32, i32
  }
  func.func @transform_4(%arg0: i32) -> (i32, i32) {
    %c0_i32 = arith.constant 0 : i32
    %c0_i32_0 = arith.constant 0 : i32
    %c0_i32_1 = arith.constant 0 : i32
    return %c0_i32, %c0_i32_0 : i32, i32
  }
  func.func @transform_5(%arg0: i32) -> (i32, i32) {
    %c0_i32 = arith.constant 0 : i32
    %c0_i32_0 = arith.constant 0 : i32
    %c0_i32_1 = arith.constant 0 : i32
    return %c0_i32, %c0_i32_0 : i32, i32
  }
  func.func @transform_6(%arg0: i32) -> (i32, i32) {
    %c0_i32 = arith.constant 0 : i32
    %c0_i32_0 = arith.constant 0 : i32
    %c0_i32_1 = arith.constant 0 : i32
    return %c0_i32, %c0_i32_0 : i32, i32
  }
  func.func @transform_7(%arg0: i32) -> (i32, i32) {
    %c0_i32 = arith.constant 0 : i32
    %c0_i32_0 = arith.constant 0 : i32
    %c0_i32_1 = arith.constant 0 : i32
    return %c0_i32, %c0_i32_0 : i32, i32
  }
  func.func @transform_8(%arg0: i32) -> (i32, i32) {
    %c0_i32 = arith.constant 0 : i32
    %c0_i32_0 = arith.constant 0 : i32
    %c0_i32_1 = arith.constant 0 : i32
    return %c0_i32, %c0_i32_0 : i32, i32
  }
  func.func @transform_9(%arg0: i32) -> (i32, i32) {
    %c0_i32 = arith.constant 0 : i32
    %c0_i32_0 = arith.constant 0 : i32
    %c0_i32_1 = arith.constant 0 : i32
    return %c0_i32, %c0_i32_0 : i32, i32
  }
  func.func @transform_10(%arg0: i32) -> (i32, i32) {
    %c0_i32 = arith.constant 0 : i32
    %c0_i32_0 = arith.constant 0 : i32
    %c0_i32_1 = arith.constant 0 : i32
    return %c0_i32, %c0_i32_0 : i32, i32
  }
  func.func @transform_11(%arg0: i32) -> (i32, i32) {
    %c0_i32 = arith.constant 0 : i32
    %c0_i32_0 = arith.constant 0 : i32
    %c0_i32_1 = arith.constant 0 : i32
    return %c0_i32, %c0_i32_0 : i32, i32
  }
  func.func @transform_12(%arg0: i32) -> (i32, i32) {
    %c0_i32 = arith.constant 0 : i32
    %c0_i32_0 = arith.constant 0 : i32
    %c0_i32_1 = arith.constant 0 : i32
    return %c0_i32, %c0_i32_0 : i32, i32
  }
  func.func @transform_13(%arg0: i32) -> (i32, i32) {
    %c0_i32 = arith.constant 0 : i32
    %c0_i32_0 = arith.constant 0 : i32
    %c0_i32_1 = arith.constant 0 : i32
    return %c0_i32, %c0_i32_0 : i32, i32
  }
  func.func @transform_14(%arg0: i32) -> (i32, i32, i32) {
    %c0_i32 = arith.constant 0 : i32
    %c0_i32_0 = arith.constant 0 : i32
    %c0_i32_1 = arith.constant 0 : i32
    return %arg0, %c0_i32, %c0_i32_0 : i32, i32, i32
  }
  func.func @transform_15(%arg0: i32) -> (i32, i32, i32) {
    %c0_i32 = arith.constant 0 : i32
    %c0_i32_0 = arith.constant 0 : i32
    %c0_i32_1 = arith.constant 0 : i32
    return %arg0, %c0_i32, %c0_i32_0 : i32, i32, i32
  }
  func.func @transform_16(%arg0: i32) -> (i32, i32, i32, i32) {
    %c0_i32 = arith.constant 0 : i32
    %c0_i32_0 = arith.constant 0 : i32
    %c0_i32_1 = arith.constant 0 : i32
    %c0_i32_2 = arith.constant 0 : i32
    return %arg0, %c0_i32, %c0_i32_0, %c0_i32_1 : i32, i32, i32, i32
  }
}

</mosaic_0001>

<bundles_post_ra>
// kernel: bert_transformer_block.1
= control target key start
LH: loop header
LB: loop body
LE: loop exit
PB: predicated region body
PF: predicated region fallthrough
CT: control target
= control target key end

     0   :  { %s2538_s0 = inlined_call_operand.vmem [shape: f32[2,8,32], index: 0, kind: input, shape index: {}]   ;;  %s2539_s1 = inlined_call_operand.vmem [shape: f32[2,1,8], index: 1, kind: input, shape index: {}]   ;;  %s2540_s2 = inlined_call_operand.vmem [shape: bf16[32,96], index: 2, kind: input, shape index: {}]   ;;  %s2541_s3 = inlined_call_operand.vmem [shape: f32[1,96], index: 3, kind: input, shape index: {}]   ;;  %s2542_s4 = inlined_call_operand.vmem [shape: bf16[32,32], index: 4, kind: input, shape index: {}]   ;;  %s2543_s5 = inlined_call_operand.vmem [shape: f32[1,32], index: 5, kind: input, shape index: {}]   ;;  %s2544_s6 = inlined_call_operand.vmem [shape: f32[1,32], index: 6, kind: input, shape index: {}]   ;;  %s2545_s7 = inlined_call_operand.vmem [shape: f32[1,32], index: 7, kind: input, shape index: {}]   ;;  %s2546_s8 = inlined_call_operand.vmem [shape: bf16[32,64], index: 8, kind: input, shape index: {}]   ;;  %s2547_s9 = inlined_call_operand.vmem [shape: f32[1,64], index: 9, kind: input, shape index: {}]   ;;  %s2548_s10 = inlined_call_operand.vmem [shape: bf16[64,32], index: 10, kind: input, shape index: {}]   ;;  %s2549_s11 = inlined_call_operand.vmem [shape: f32[1,32], index: 11, kind: input, shape index: {}]   ;;  %s2550_s12 = inlined_call_operand.vmem [shape: f32[1,32], index: 12, kind: input, shape index: {}]   ;;  %s2551_s13 = inlined_call_operand.vmem [shape: f32[1,32], index: 13, kind: input, shape index: {}]   ;;  %s2552_s14 = inlined_call_operand.hbm [shape: f32[2,8,32], index: 14, kind: output, shape index: {0}]   ;;  %s2553_s15 = inlined_call_operand.hbm [shape: f32[2,8,32], index: 15, kind: output, shape index: {1}]   ;;  %s2554_s16 = inlined_call_operand.hbm [shape: f32[2,4,8,8], index: 16, kind: output, shape index: {2}]  }
   0x1   :  { %2558 = sst [smem:[#allocation10_spill]] %s2538_s0 }
   0x2   :  { %2559 = sst [smem:[#allocation11_spill]] %s2539_s1 }
   0x3   :  { %2560 = sst [smem:[#allocation12_spill]] %s2540_s2 }
   0x4   :  { %2561 = sst [smem:[#allocation13_spill]] %s2541_s3 }
   0x5   :  { %2562 = sst [smem:[#allocation14_spill]] %s2542_s4 }
   0x6   :  { %2563 = sst [smem:[#allocation15_spill]] %s2543_s5 }
   0x7   :  { %2564 = sst [smem:[#allocation16_spill]] %s2544_s6 }
   0x8   :  { %2565 = sst [smem:[#allocation17_spill]] %s2545_s7 }
   0x9   :  { %2566 = sst [smem:[#allocation18_spill]] %s2546_s8 }
   0xa   :  { %22 = vsyncpa [#allocation3], 0 }
   0xb   :  { %24 = vsyncpa [#allocation3 + $0x1], 0 }
   0xc   :  { %25 = vsyncpa [#allocation5], 0 }
   0xd   :  { %27 = vsyncpa [#allocation5 + $0x1], 0  ;;  %s2172_s21 = smov 0   ;;  %s2174_s22 = smov 0  }
   0xe   :  { %s2176_s23 = smov 0   ;;  %s2178_s24 = smov 0  }
   0xf LB: > { %s2193_s25 = sadd.s32 4294967295, %s2065_s24   ;;  %s2555_s26 = sadd.s32 4294967294, %s2065_s24   ;;  %s2065_s24 = sphi %s2178_s24, %s2586_s24   ;;  %s2061_s23 = sphi %s2176_s23, %s2585_s23   ;;  %s2057_s22 = sphi %s2174_s22, %s2584_s22   ;;  %s2053_s21 = sphi %s2172_s21, %s2583_s21  }
  0x10   : > { %s2197_s27 = sadd.s32 1, %s2065_s24   ;;  %s344_s28 = sadd.s32 1, %s2061_s23 }
  0x11   : > { %s341_s29 = ssub.s32 %s2065_s24, %s2197_s27  ;;  %p354_p0 = scmp.ne.s32.totalorder %s2061_s23, %s2057_s22 }
  0x12   : > { %p342_p1 = scmp.eq.s32.totalorder %s341_s29, 0  ;;  %p355_p2 = scmp.eq.s32.totalorder %s2193_s25, 1 }
  0x13   : > { %p360_p3 = scmp.ne.s32.totalorder %s2057_s22, %s2053_s21  ;;  %p361_p4 = scmp.eq.s32.totalorder %s2555_s26, 1 }
  0x14   : > { %s2210_s30 = scalar_select %p342_p1, %s2061_s23, %s344_s28  }
  0x15   : > { %p2212_p5 = por %p355_p2, %p354_p0  ;;  %p2216_p6 = por %p361_p4, %p360_p3 }
  0x16   : > { %2567 = sst [smem:[#allocation9_spill]] %s2210_s30  ;;  %p1685_p7 = scmp.ge.s32.totalorder %s2065_s24, 1 }
  0x17   : > { %p480_p8 = scmp.lt.s32.totalorder %s2065_s24, 3 }
  0x19   : > { %p481_p9 = pnand %p1685_p7, %p480_p8 }
  0x1a   : > { %s2570_s2 = sld [smem:[#allocation12_spill]] (!%p481_p9)  ;;  %v2067_v1 = vmov (!%p481_p9), 0.0   ;;  %vm2068_vm0 = vmmov (!%p481_p9), 0   ;;  %p542_p10 = scmp.lt.s32.totalorder (!%p481_p9), %s2193_s25, 1  ;;  %vm576_vm1 = vcmask (!%p481_p9), 261120   ;;  %vm623_vm2 = vcmask (!%p481_p9), 64512  }
  0x1b   : > { %484 = sbr.rel (%p481_p9) target bundleno = 3630 (0xe2e), region = 76  ;;  %1765 = vmatprep.subr.bf16.mxu0 (!%p481_p9), %v2067_v1  ;;  %1773 = vmatprep.subr.mxu1 (!%p481_p9), %v2067_v1  ;;  %s2571_s30 = sld [smem:[#allocation10_spill]] (!%p481_p9)  ;;  %vm725_vm3 = vcmask (!%p481_p9), 1043456   ;;  %vm1206_vm4 = vcmask (!%p481_p9), 130048   ;;  %vm1208_vm5 = vcmask (!%p481_p9), 195584   ;;  %vm1425_vm6 = vcmask (!%p481_p9), 523264  }
  0x1c   : > { %1769 = vmatprep.mubr.msk.bf16.mxu0 (!%p481_p9), %vm2068_vm0, %v2067_v1  ;;  %1775 = vmatprep.mubr.msk.f32.mxu1 (!%p481_p9), %vm2068_vm0, %v2067_v1  ;;  %s2572_s3 = sld [smem:[#allocation13_spill]] (!%p481_p9)  ;;  %s2069_s26 = smov (!%p481_p9), 96  }
  0x1d   : > { %s2573_s1 = sld [smem:[#allocation11_spill]] (!%p481_p9)  ;;  %s2074_s19 = smov (!%p481_p9), 112  }
  0x1e   : > { %s2574_s4 = sld [smem:[#allocation14_spill]] (!%p481_p9)  ;;  %s2575_s5 = sld [smem:[#allocation15_spill]] (!%p481_p9) }
  0x1f   : > { %s2576_s8 = sld [smem:[#allocation18_spill]] (!%p481_p9)  ;;  %s2577_s6 = sld [smem:[#allocation16_spill]] (!%p481_p9) }
  0x20   : > { %v1911_v0 = vld [vmem:[%s2570_s2] sm:$0xff] (!%p481_p9)   ;;  %v1912_v2 = vld [vmem:[%s2570_s2 + $0x8] sm:$0xff] (!%p481_p9)   ;;  %s2271_s2 = sand.u32 (!%p481_p9), 1, %s2057_s22   ;;  %s2578_s7 = sld [smem:[#allocation17_spill]] (!%p481_p9) }
  0x21   : > { %1766 = vmatpush3.bf16.msra.mxu0 (!%p481_p9), %v1911_v0  ;;  %s1688_s28 = sshll.u32 (!%p481_p9), %s2271_s2, 5 }
  0x22   : > { %1767 = vmatprep.subr.bf16.mxu0 %v2067_v1  ;;  %s2237_s29 = scalar_select %p542_p10, %s2193_s25, 1  ;;  %v1690_v5 = vld [vmem:[%s2572_s3] ss:$0 sm:$0xff] }
  0x24   : > { %s1689_s18 = sshll.u32 %s2237_s29, 3 }
  0x25   : > { %1768 = vmatpush3.bf16.msra.mxu0 %v1912_v2  ;;  %s545_s20 = scalar_lea.vmem %s2571_s30, %s1689_s18  ;;  %s2070_s30 = smov 64  }
  0x26   : > { %1795 = vmatprep.subr.mxu0 %v2067_v1  ;;  %v2244_v3 = vld [vmem:[%s545_s20] sm:$0xff]  ;;  %s548_s20 = scalar_lea.vmem %s2573_s1, %s2237_s29  ;;  %s2072_s29 = smov 88  }
  0x27   : > { %v552_v4 = vpack.c.bf16 %v2244_v3, %v2244_v3  ;;  %v2278_v15 = vld [vmem:[%s548_s20] ss:$0 sm:$0xff]  ;;  %s2073_s18 = smov 120   ;;  %s2075_s20 = smov 80  }
  0x28   : > { %s1728_s1 = sshll.u32 %s2193_s25, 7 }
  0x29   : > { %1770 = vmatmul.mubr.msk.bf16.vlgmr.msra.gmra.mrb[0].mxu0 %vm576_vm1, %v552_v4 }
  0x2a   : > { %1797 = vmatprep.mubr.msk.f32.mxu0 %vm2068_vm0, %v2067_v1 }
  0xfc   : > { %v614_v6 = vpop.f32.mrb[0].mxu0 }
  0xfd   : > { %v2254_v7 = vadd.f32 %v1690_v5, %v614_v6  ;;  %v1771_v8 = vpop.f32.mrb[1].mxu0 }
  0xfe   : > { %v617_v9 = vpop.f32.mrb[2].mxu0 }
  0xff   : > { %621 = vrot.lane.b32.xlu0 %v2254_v7, %s2069_s26  ;;  %v1772_v10 = vpop.f32.mrb[3].mxu0  ;;  %v2259_v11 = vpack.c.bf16 %v2254_v7, %v2254_v7  ;;  %s2281_s26 = scalar_lea.vmem [#allocation6], %s1688_s28  ;;  %s2076_s28 = smov 72  }
 0x100   : > { %s1550_s3 = sshll.u32 %s2281_s26, 4  ;;  %s2447_s3 = int_to_ptr.vmem [resolvable:$true] %s1550_s3 }
 0x101   : > { %720 = vrot.lane.b32.xlu1 %v2259_v11, %s2070_s30  ;;  %s2071_s30 = smov 56  }
 0x171   : > { %v622_v12 = vpop.permute.xlu0 %621 }
 0x172   : > { %1774 = vmatpush3.xpose.msk.msra.mxu1 %vm623_vm2, %v622_v12 }
 0x173   : > { %v721_v13 = vpop.permute.xlu1 %720  ;;  %1778 = vmatprep.subr.bf16.mxu1 %v2067_v1 }
 0x174   : > { %v727_v14 = vsel %vm725_vm3, %v721_v13, 0 }
 0x175   : > { %1776 = vmatmul.mubr.msk.f32.vlgmr.msra.gmra.mrb[0].mxu1 %vm623_vm2, %v2254_v7 }
 0x176   : > { %1779 = vmatpush3.bf16.msra.mxu1 %v727_v14  ;;  %1780 = vmatprep.mubr.msk.bf16.mxu1 %vm2068_vm0, %v2067_v1 }
 0x177   : > { %1784 = vmatprep.subr.mxu1 %v2067_v1 }
 0x248   : > { %v694_v16 = vpop.f32.mrb[0].mxu1 }
 0x249   : > { %v698_v17 = vmul.f32 0.35355338, %v694_v16  ;;  %v1777_v18 = vpop.f32.mrb[1].mxu1 }
 0x24b   : > { %v705_v19 = vadd.f32 %v2278_v15, %v698_v17 }
 0x24d   : > { %1189 = vst.msk [vmem:[%s2281_s26] sm:$0xff] %vm623_vm2, %v705_v19  ;;  %v706_v20 = vsel %vm623_vm2, %v705_v19, -inf }
 0x24e   : > { %707 = vmax.xlane.f32.xlu0 %v706_v20 }
 0x264   : > { %861 = vrot.lane.b32.xlu0 %v2259_v11, %s2071_s30  ;;  %s2077_s30 = smov 104  }
 0x2db   : > { %v708_v21 = vpop.xlane.xlu0 %707 }
 0x2dc   : > { %v709_v22 = vsub.f32 %v705_v19, %v708_v21 }
 0x2de   : > { %v710_v23 = vmul.f32 1.442695, %v709_v22 }
 0x2df   : > { %v862_v31 = vpop.permute.xlu0 %861 }
 0x2e0   : > { %1921 = vpow2.f32 %v710_v23  ;;  %v867_v33 = vsel %vm725_vm3, %v862_v31, 0  ;;  %v1914_v31 = vld [vmem:[%s2574_s4 + $0x8] sm:$0xff]  }
 0x2ea   : > { %v1922_v24 = vpop.eup %1921 }
 0x2eb   : > { %v712_v25 = vsel %vm623_vm2, %v1922_v24, 0.0 }
 0x2ec   : > { %713 = vadd.xlane.f32.xlu1 %v712_v25 }
 0x2fd   : > { %771 = vrot.lane.b32.xlu1 %v2254_v7, %s2072_s29  ;;  %s2078_s29 = smov 40  }
 0x301   : > { %769 = vrot.lane.b32.xlu1 %v2254_v7, %s2073_s18  ;;  %s2079_s18 = smov 48  }
 0x379   : > { %v714_v26 = vpop.xlane.xlu1 %713 }
 0x37a   : > { %1923 = vrcp.f32 %v714_v26 }
 0x37d   : > { %v772_v30 = vpop.permute.xlu1 %771 }
 0x381   : > { %v770_v32 = vpop.permute.xlu1 %769 }
 0x384   : > { %v1924_v27 = vpop.eup %1923 }
 0x385   : > { %v716_v28 = vmul.f32 %v1924_v27, %v1922_v24 }
 0x387   : > { %v717_v29 = vpack.c.bf16 %v716_v28, %v716_v28 }
 0x389   : > { %1781 = vmatmul.mubr.msk.bf16.vlgmr.msra.gmra.mrb[4].mxu1 %vm623_vm2, %v717_v29 }
 0x38a   : > { %1785 = vmatpush3.xpose.msk.msra.mxu1 %vm623_vm2, %v772_v30  ;;  %1786 = vmatprep.mubr.msk.f32.mxu1 %vm2068_vm0, %v2067_v1  ;;  %v1913_v30 = vld [vmem:[%s2574_s4] sm:$0xff]  }
 0x38b   : > { %1789 = vmatprep.subr.bf16.mxu1 %v2067_v1 }
 0x391   : > { %1787 = vmatmul.mubr.msk.f32.vlgmr.msra.gmra.mrb[2].mxu1 %vm623_vm2, %v770_v32 }
 0x392   : > { %1790 = vmatpush3.bf16.msra.mxu1 %v867_v33  ;;  %1791 = vmatprep.mubr.msk.bf16.mxu1 %vm2068_vm0, %v2067_v1 }
 0x393   : > { %1806 = vmatprep.subr.mxu1 %v2067_v1 }
 0x45c   : > { %v2300_v34 = vpop.f32.mrb[4].mxu1 }
 0x45d   : > { %v1782_v35 = vpop.f32.mrb[5].mxu1 }
 0x45e   : > { %v766_v36 = vpop.f32.mrb[6].mxu1 }
 0x45f   : > { %v1783_v37 = vpop.f32.mrb[7].mxu1 }
 0x464   : > { %v843_v38 = vpop.f32.mrb[2].mxu1 }
 0x465   : > { %v847_v39 = vmul.f32 0.35355338, %v843_v38  ;;  %v1788_v40 = vpop.f32.mrb[3].mxu1 }
 0x467   : > { %v848_v41 = vadd.f32 %v2278_v15, %v847_v39 }
 0x469   : > { %1190 = vst.msk [vmem:[%s2281_s26 + $0x8] sm:$0xff] %vm623_vm2, %v848_v41  ;;  %v849_v42 = vsel %vm623_vm2, %v848_v41, -inf }
 0x46a   : > { %850 = vmax.xlane.f32.xlu1 %v849_v42 }
 0x47b   : > { %909 = vrot.lane.b32.xlu1 %v2254_v7, %s2074_s19  ;;  %s2556_s19 = smov 8  }
 0x4f7   : > { %v851_v43 = vpop.xlane.xlu1 %850 }
 0x4f8   : > { %v852_v44 = vsub.f32 %v848_v41, %v851_v43 }
 0x4fa   : > { %v853_v45 = vmul.f32 1.442695, %v852_v44 }
 0x4fb   : > { %v910_v50 = vpop.permute.xlu1 %909 }
 0x4fc   : > { %1925 = vpow2.f32 %v853_v45 }
 0x506   : > { %v1926_v46 = vpop.eup %1925 }
 0x507   : > { %v855_v47 = vsel %vm623_vm2, %v1926_v46, 0.0 }
 0x508   : > { %856 = vadd.xlane.f32.xlu0 %v855_v47 }
 0x51e   : > { %911 = vrot.lane.b32.xlu0 %v2254_v7, %s2075_s20 }
 0x522   : > { %1051 = vrot.lane.b32.xlu0 %v2254_v7, %s2076_s28  ;;  %s2557_s28 = sshll.u32 %s2271_s2, 3 }
 0x526   : > { %1049 = vrot.lane.b32.xlu0 %v2254_v7, %s2077_s30 }
 0x595   : > { %v857_v48 = vpop.xlane.xlu0 %856 }
 0x596   : > { %1927 = vrcp.f32 %v857_v48  ;;  %v1707_v48 = vld [vmem:[%s2575_s5] ss:$0 sm:$0xff] }
 0x599   : > { %v912_v49 = vpop.permute.xlu0 %911 }
 0x59a   : > { %1796 = vmatpush3.xpose.msk.msra.mxu0 %vm623_vm2, %v912_v49 }
 0x59b   : > { %1800 = vmatprep.subr.bf16.mxu0 %v2067_v1 }
 0x59d   : > { %1798 = vmatmul.mubr.msk.f32.vlgmr.msra.gmra.mrb[4].mxu0 %vm623_vm2, %v910_v50  ;;  %v1052_v54 = vpop.permute.xlu0 %1051 }
 0x59e   : > { %1802 = vmatprep.mubr.msk.bf16.mxu0 %vm2068_vm0, %v2067_v1 }
 0x5a0   : > { %v1928_v51 = vpop.eup %1927 }
 0x5a1   : > { %v859_v52 = vmul.f32 %v1928_v51, %v1926_v46  ;;  %v1050_v55 = vpop.permute.xlu0 %1049 }
 0x5a3   : > { %v860_v53 = vpack.c.bf16 %v859_v52, %v859_v52 }
 0x5a5   : > { %1792 = vmatmul.mubr.msk.bf16.vlgmr.msra.gmra.mrb[8].mxu1 %vm623_vm2, %v860_v53 }
 0x5a6   : > { %1807 = vmatpush3.xpose.msk.msra.mxu1 %vm623_vm2, %v1052_v54  ;;  %1808 = vmatprep.mubr.msk.f32.mxu1 %vm2068_vm0, %v2067_v1 }
 0x5a7   : > { %1811 = vmatprep.subr.bf16.mxu1 %v2067_v1 }
 0x5ad   : > { %1809 = vmatmul.mubr.msk.f32.vlgmr.msra.gmra.mrb[12].mxu1 %vm623_vm2, %v1050_v55 }
 0x5ae   : > { %1813 = vmatprep.mubr.msk.bf16.mxu1 %vm2068_vm0, %v2067_v1 }
 0x670   : > { %v983_v56 = vpop.f32.mrb[4].mxu0 }
 0x671   : > { %v987_v57 = vmul.f32 0.35355338, %v983_v56  ;;  %v1799_v58 = vpop.f32.mrb[5].mxu0 }
 0x673   : > { %v988_v59 = vadd.f32 %v2278_v15, %v987_v57 }
 0x675   : > { %1191 = vst.msk [vmem:[%s2281_s26 + $0x10] sm:$0xff] %vm623_vm2, %v988_v59  ;;  %v989_v60 = vsel %vm623_vm2, %v988_v59, -inf }
 0x676   : > { %990 = vmax.xlane.f32.xlu0 %v989_v60  ;;  %v1915_v60 = vld [vmem:[%s2576_s8] sm:$0xff]  }
 0x678   : > { %v903_v61 = vpop.f32.mrb[8].mxu1 }
 0x679   : > { %v1793_v62 = vpop.f32.mrb[9].mxu1 }
 0x67a   : > { %v906_v63 = vpop.f32.mrb[10].mxu1 }
 0x67b   : > { %v1794_v0 = vpop.f32.mrb[11].mxu1 }
 0x680   : > { %v1123_v2 = vpop.f32.mrb[12].mxu1 }
 0x681   : > { %v1127_v4 = vmul.f32 0.35355338, %v1123_v2  ;;  %v1810_v5 = vpop.f32.mrb[13].mxu1  ;;  %v1711_v2 = vld [vmem:[%s2577_s6] ss:$0 sm:$0xff]  ;;  %s2083_s6 = smov [#allocation4]  }
 0x682   : > { %v1712_v5 = vld [vmem:[%s2578_s7] ss:$0 sm:$0xff]  ;;  %s1947_s7 = sshll.u32 %s2083_s6, 4  ;;  %s1948_s7 = int_to_ptr.vmem [resolvable:$false] %s1947_s7 }
 0x683   : > { %v1128_v6 = vadd.f32 %v2278_v15, %v1127_v4 }
 0x685   : > { %1192 = vst.msk [vmem:[%s2281_s26 + $0x18] sm:$0xff] %vm623_vm2, %v1128_v6  ;;  %v1129_v7 = vsel %vm623_vm2, %v1128_v6, -inf }
 0x686   : > { %1130 = vmax.xlane.f32.xlu1 %v1129_v7 }
 0x697   : > { %1141 = vrot.lane.b32.xlu1 %v2259_v11, %s2078_s29  ;;  %s2382_s29 = scalar_lea.vmem [#allocation4], %s2557_s28  ;;  %s1505_s28 = sand.u32 1, %s2193_s25  }
 0x698   : > { %s2425_s4 = scalar_lea.sflag [#allocation5], %s1505_s28 }
 0x703   : > { %v991_v8 = vpop.xlane.xlu0 %990 }
 0x704   : > { %v992_v9 = vsub.f32 %v988_v59, %v991_v8 }
 0x706   : > { %v993_v10 = vmul.f32 1.442695, %v992_v9  ;;  %v1917_v9 = vld [vmem:[%s2548_s10] sm:$0xff]  }
 0x708   : > { %1929 = vpow2.f32 %v993_v10  ;;  %v1918_v10 = vld [vmem:[%s2548_s10 + $0x8] sm:$0xff]  }
 0x712   : > { %v1930_v12 = vpop.eup %1929 }
 0x713   : > { %v1131_v13 = vpop.xlane.xlu1 %1130  ;;  %v995_v14 = vsel %vm623_vm2, %v1930_v12, 0.0 }
 0x714   : > { %v1132_v16 = vsub.f32 %v1128_v6, %v1131_v13  ;;  %996 = vadd.xlane.f32.xlu0 %v995_v14  ;;  %v1920_v13 = vld [vmem:[%s2548_s10 + $0x18] sm:$0xff]   ;;  %v1713_v14 = vld [vmem:[%s2547_s9] ss:$0 sm:$0xff] }
 0x716   : > { %v1133_v17 = vmul.f32 1.442695, %v1132_v16 }
 0x717   : > { %v1142_v15 = vpop.permute.xlu1 %1141 }
 0x718   : > { %1931 = vpow2.f32 %v1133_v17  ;;  %v1147_v18 = vsel %vm725_vm3, %v1142_v15, 0 }
 0x719   : > { %1812 = vmatpush3.bf16.msra.mxu1 %v1147_v18 }
 0x71a   : > { %1825 = vmatprep.subr.bf16.mxu1 %v2067_v1 }
 0x722   : > { %v1932_v19 = vpop.eup %1931 }
 0x723   : > { %v1135_v20 = vsel %vm623_vm2, %v1932_v19, 0.0 }
 0x724   : > { %1136 = vadd.xlane.f32.xlu0 %v1135_v20 }
 0x73a   : > { %1001 = vrot.lane.b32.xlu0 %v2259_v11, %s2079_s18  ;;  %s2081_s18 = smov 16  }
 0x73e   : > { %1194 = vrot.lane.b32.xlu0 %v903_v61, %s2556_s19  ;;  %s2082_s19 = smov 24  }
 0x7a1   : > { %v997_v21 = vpop.xlane.xlu0 %996 }
 0x7a2   : > { %1933 = vrcp.f32 %v997_v21 }
 0x7ac   : > { %v1934_v22 = vpop.eup %1933 }
 0x7ad   : > { %v999_v24 = vmul.f32 %v1934_v22, %v1930_v12  ;;  %v1919_v12 = vld [vmem:[%s2548_s10 + $0x10] sm:$0xff]  }
 0x7af   : > { %v1000_v27 = vpack.c.bf16 %v999_v24, %v999_v24 }
 0x7b1   : > { %v1137_v23 = vpop.xlane.xlu0 %1136 }
 0x7b2   : > { %1935 = vrcp.f32 %v1137_v23 }
 0x7b5   : > { %v1002_v25 = vpop.permute.xlu0 %1001 }
 0x7b6   : > { %v1007_v26 = vsel %vm725_vm3, %v1002_v25, 0 }
 0x7b7   : > { %1801 = vmatpush3.bf16.msra.mxu0 %v1007_v26 }
 0x7b8   : > { %1817 = vmatprep.subr.bf16.mxu0 %v2067_v1 }
 0x7b9   : > { %v1195_v41 = vpop.permute.xlu0 %1194 }
 0x7ba   : > { %1803 = vmatmul.mubr.msk.bf16.vlgmr.msra.gmra.mrb[8].mxu0 %vm623_vm2, %v1000_v27  ;;  %v1205_v43 = vsel %vm623_vm2, %v2300_v34, %v1195_v41 }
 0x7bb   : > { %1821 = vmatprep.mubr.msk.bf16.mxu0 %vm2068_vm0, %v2067_v1  ;;  %1818 = vmatpush3.bf16.msra.mxu0 %v1913_v30 }
 0x7bc   : > { %v1936_v11 = vpop.eup %1935  ;;  %1819 = vmatprep.subr.bf16.mxu0 %v2067_v1 }
 0x7bd   : > { %v1139_v28 = vmul.f32 %v1936_v11, %v1932_v19 }
 0x7bf   : > { %v1140_v29 = vpack.c.bf16 %v1139_v28, %v1139_v28  ;;  %1820 = vmatpush3.bf16.msra.mxu0 %v1914_v31  ;;  %v1717_v28 = vld [vmem:[%s2549_s11] ss:$0 sm:$0xff] }
 0x7c0   : > { %1833 = vmatprep.subr.bf16.mxu0 %v2067_v1 }
 0x7c1   : > { %1814 = vmatmul.mubr.msk.bf16.vlgmr.msra.gmra.mrb[16].mxu1 %vm623_vm2, %v1140_v29 }
 0x7c2   : > { %1829 = vmatprep.mubr.msk.bf16.mxu1 %vm2068_vm0, %v2067_v1  ;;  %1826 = vmatpush3.bf16.msra.mxu1 %v1915_v60 }
 0x7c3   : > { %1827 = vmatprep.subr.bf16.mxu1 %v2067_v1 }
 0x88d   : > { %v1043_v32 = vpop.f32.mrb[8].mxu0 }
 0x88e   : > { %1198 = vrot.lane.b32.xlu1 %v1043_v32, %s2081_s18  ;;  %v1804_v33 = vpop.f32.mrb[9].mxu0  ;;  %s2421_s18 = scalar_lea.hbm %s2553_s15, %s1728_s1 }
 0x88f   : > { %v1046_v35 = vpop.f32.mrb[10].mxu0 }
 0x890   : > { %v1805_v36 = vpop.f32.mrb[11].mxu0 }
 0x894   : > { %v1183_v37 = vpop.f32.mrb[16].mxu1 }
 0x895   : > { %1202 = vrot.lane.b32.xlu0 %v1183_v37, %s2082_s19  ;;  %v1815_v38 = vpop.f32.mrb[17].mxu1  ;;  %s1537_s19 = sshll.u32 %s2382_s29, 4  ;;  %s1538_s19 = int_to_ptr.vmem [resolvable:$true] %s1537_s19 }
 0x896   : > { %v1186_v39 = vpop.f32.mrb[18].mxu1  ;;  %s1943_s5 = scalar_lea.vmem %s1538_s19, 128  ;;  %p1950_p0 = scmp.lt.s32.totalorder %s1538_s19, %s1948_s7 }
 0x897   : > { %v1816_v40 = vpop.f32.mrb[19].mxu1  ;;  %p1944_p11 = scmp.ne.s32.totalorder %s1538_s19, %s1943_s5 }
 0x899   : > { %p1945_p12 = pnand %p1944_p11, %p2212_p5 }
 0x89b   : > { %p1946_p13 = pneg %p1945_p12 }
 0x900   : > { %v1199_v42 = vpop.permute.xlu1 %1198 }
 0x901   : > { %v1207_v44 = vsel %vm1206_vm4, %v1205_v43, %v1199_v42 }
 0x907   : > { %v1203_v45 = vpop.permute.xlu0 %1202 }
 0x908   : > { %v1209_v46 = vsel %vm1208_vm5, %v1207_v44, %v1203_v45 }
 0x909   : > { %v1210_v47 = vpack.c.bf16 %v1209_v46, %v1209_v46 }
 0x90b   : > { %1822 = vmatmul.mubr.msk.bf16.vlgmr.msra.gmra.mrb[12].mxu0 %vm576_vm1, %v1210_v47 }
 0x90c   : > { %1841 = vmatprep.mubr.msk.bf16.mxu0 %vm2068_vm0, %v2067_v1  ;;  %1834 = vmatpush3.bf16.msra.mxu0 %v1917_v9 }
 0x90d   : > { %1835 = vmatprep.subr.bf16.mxu0 %v2067_v1 }
 0x910   : > { %1836 = vmatpush3.bf16.msra.mxu0 %v1918_v10 }
 0x911   : > { %1837 = vmatprep.subr.bf16.mxu0 %v2067_v1 }
 0x914   : > { %1838 = vmatpush3.bf16.msra.mxu0 %v1919_v12 }
 0x915   : > { %1839 = vmatprep.subr.bf16.mxu0 %v2067_v1 }
 0x918   : > { %1840 = vmatpush3.bf16.msra.mxu0 %v1920_v13 }
 0x9de   : > { %v1271_v49 = vpop.f32.mrb[12].mxu0 }
 0x9df   : > { %v1272_v50 = vadd.f32 %v1707_v48, %v1271_v49  ;;  %v1823_v51 = vpop.f32.mrb[13].mxu0 }
 0x9e0   : > { %v1274_v52 = vpop.f32.mrb[14].mxu0 }
 0x9e1   : > { %v1824_v53 = vpop.f32.mrb[15].mxu0  ;;  %v1277_v34 = vadd.f32 %v1272_v50, %v2244_v3  ;;  %v1916_v3 = vld [vmem:[%s2576_s8 + $0x8] sm:$0xff]   ;;  %s1949_s8 = scalar_lea.vmem %s1948_s7, 256 }
 0x9e2   : > { %1828 = vmatpush3.bf16.msra.mxu1 %v1916_v3  ;;  %p1951_p1 = scmp.lt.s32.totalorder %s1949_s8, %s1943_s5 }
 0x9e3   : > { %v1280_v54 = vsel %vm576_vm1, %v1277_v34, 0.0 }
 0x9e4   : > { %1281 = vadd.xlane.f32.xlu1 %v1280_v54  ;;  %p1952_p2 = por %p1951_p1, %p1950_p0 }
 0x9e6   : > { %p1953_p3 = pnand %p1952_p2, %p1946_p13 }
 0xa71   : > { %v1282_v55 = vpop.xlane.xlu1 %1281 }
 0xa72   : > { %v1284_v56 = vmul.f32 0.03125, %v1282_v55 }
 0xa74   : > { %v1285_v57 = vsub.f32 %v1277_v34, %v1284_v56 }
 0xa76   : > { %v1286_v58 = vmul.f32 %v1285_v57, %v1285_v57 }
 0xa78   : > { %v1287_v59 = vsel %vm576_vm1, %v1286_v58, 0.0 }
 0xa79   : > { %1288 = vadd.xlane.f32.xlu0 %v1287_v59 }
 0xb06   : > { %v1289_v61 = vpop.xlane.xlu0 %1288 }
 0xb07   : > { %v1290_v62 = vmul.f32 0.03125, %v1289_v61 }
 0xb09   : > { %v1291_v63 = vadd.f32 1e-05, %v1290_v62 }
 0xb0b   : > { %1937 = vrsqrt.f32 %v1291_v63 }
 0xb15   : > { %v1938_v0 = vpop.eup %1937 }
 0xb16   : > { %v1293_v4 = vmul.f32 %v1938_v0, %v1285_v57 }
 0xb18   : > { %v1300_v6 = vmul.f32 %v1711_v2, %v1293_v4 }
 0xb1a   : > { %v1307_v7 = vadd.f32 %v1712_v5, %v1300_v6 }
 0xb1c   : > { %v1309_v8 = vpack.c.bf16 %v1307_v7, %v1307_v7  ;;  %1308 = vst.msk [vmem:[%s2382_s29] sm:$0xff] %vm576_vm1, %v1307_v7 }
 0xb1e   : > { %1830 = vmatmul.mubr.msk.bf16.vlgmr.msra.gmra.mrb[20].mxu1 %vm576_vm1, %v1309_v8 }
 0xbf1   : > { %v1370_v16 = vpop.f32.mrb[20].mxu1 }
 0xbf2   : > { %v1371_v17 = vadd.f32 %v1713_v14, %v1370_v16  ;;  %v1831_v15 = vpop.f32.mrb[21].mxu1 }
 0xbf3   : > { %v1373_v18 = vpop.f32.mrb[22].mxu1 }
 0xbf4   : > { %v1377_v19 = vmul.f32 %v1371_v17, %v1371_v17  ;;  %v1832_v20 = vpop.f32.mrb[23].mxu1  ;;  %v1376_v25 = vmul.f32 0.5, %v1371_v17 }
 0xbf6   : > { %v1378_v21 = vmul.f32 %v1377_v19, %v1371_v17 }
 0xbf8   : > { %v1379_v22 = vmul.f32 0.044715, %v1378_v21 }
 0xbfa   : > { %v1380_v23 = vadd.f32 %v1379_v22, %v1371_v17 }
 0xbfc   : > { %v1381_v24 = vmul.f32 0.7978846, %v1380_v23 }
 0xbfe   : > { %1939 = vtanh.f32 %v1381_v24 }
 0xc08   : > { %v1940_v1 = vpop.eup %1939 }
 0xc09   : > { %v1383_v26 = vadd.f32 1.0, %v1940_v1 }
 0xc0b   : > { %v1384_v27 = vmul.f32 %v1383_v26, %v1376_v25 }
 0xc0d   : > { %v1385_v11 = vpack.c.bf16 %v1384_v27, %v1384_v27 }
 0xc0f   : > { %1842 = vmatmul.mubr.msk.bf16.vlgmr.msra.gmra.mrb[16].mxu0 %vm1425_vm6, %v1385_v11 }
 0xce2   : > { %v1463_v29 = vpop.f32.mrb[16].mxu0 }
 0xce3   : > { %v1464_v30 = vadd.f32 %v1717_v28, %v1463_v29  ;;  %v1843_v31 = vpop.f32.mrb[17].mxu0 }
 0xce4   : > { %v1466_v32 = vpop.f32.mrb[18].mxu0 }
 0xce5   : > { %v1844_v33 = vpop.f32.mrb[19].mxu0  ;;  %v1469_v35 = vadd.f32 %v1464_v30, %v1307_v7 }
 0xce7   : > { %v1472_v36 = vsel %vm576_vm1, %v1469_v35, 0.0 }
 0xce8   : > { %1473 = vadd.xlane.f32.xlu0 %v1472_v36 }
 0xd75   : > { %v1474_v37 = vpop.xlane.xlu0 %1473 }
 0xd76   : > { %v1475_v38 = vmul.f32 0.03125, %v1474_v37 }
 0xd78   : > { %v2409_v39 = vsub.f32 %v1469_v35, %v1475_v38 }
 0xd7a   : > { %v1477_v40 = vmul.f32 %v2409_v39, %v2409_v39 }
 0xd7c   : > { %v1478_v41 = vsel %vm576_vm1, %v1477_v40, 0.0 }
 0xd7d   : > { %1479 = vadd.xlane.f32.xlu1 %v1478_v41 }
 0xd7e   : > { %1956 = shalt.err (!%p1953_p3)
}
 0xd7f   : > { %s1957_s29 = scalar_lea.hbm %s2421_s18, 128  ;;  %s1961_s6 = scalar_lea.hbm %s2553_s15, 256 }
 0xd80   : > { %p1958_p4 = scmp.ne.s32.totalorder %s2421_s18, %s1957_s29  ;;  %p1962_p9 = scmp.lt.u32.totalorder %s2421_s18, %s2553_s15 }
 0xd81   : > { %p1963_p10 = scmp.lt.u32.totalorder %s1961_s6, %s1957_s29  ;;  %p1965_p12 = scmp.lt.u32.totalorder %s1957_s29, %s2421_s18 }
 0xd82   : > { %p1959_p7 = pnand %p1958_p4, %p2212_p5 }
 0xd83   : > { %p1964_p11 = por %p1963_p10, %p1962_p9 }
 0xd84   : > { %p1960_p8 = pneg %p1959_p7 }
 0xd85   : > { %p1966_p13 = por %p1965_p12, %p1964_p11 }
 0xd87   : > { %p1967_p0 = pnand %p1966_p13, %p1960_p8 }
 0xd89   : > { %1970 = shalt.err (!%p1967_p0)
}
 0xd8a   : > { %1846 = dma.vmem_to_hbm [thread:$0]  (%p2212_p5), %s1538_s19, 128, %s2421_s18, %s2425_s4  }
 0xd8b   : > { %s1734_s5 = sshll.u32 %s2193_s25, 9  ;;  %s1971_s20 = scalar_lea.vmem %s2447_s3, 512 }
 0xd8c   : > { %s2453_s28 = scalar_lea.hbm %s2554_s16, %s1734_s5  ;;  %p1972_p1 = scmp.ne.s32.totalorder %s2447_s3, %s1971_s20 }
 0xd8d   : > { %s2084_s6 = smov [#allocation6]  }
 0xd8e   : > { %p1973_p2 = pnand %p1972_p1, %p2212_p5  ;;  %s1975_s30 = sshll.u32 %s2084_s6, 4  ;;  %s1976_s30 = int_to_ptr.vmem [resolvable:$false] %s1975_s30 }
 0xd8f   : > { %s1977_s26 = scalar_lea.vmem %s1976_s30, 1024  ;;  %p1978_p4 = scmp.lt.s32.totalorder %s2447_s3, %s1976_s30 }
 0xd90   : > { %p1974_p3 = pneg %p1973_p2  ;;  %p1979_p7 = scmp.lt.s32.totalorder %s1977_s26, %s1971_s20 }
 0xd92   : > { %p1980_p8 = por %p1979_p7, %p1978_p4 }
 0xd94   : > { %p1981_p9 = pnand %p1980_p8, %p1974_p3 }
 0xd96   : > { %1984 = shalt.err (!%p1981_p9)
}
 0xd97   : > { %s1985_s18 = scalar_lea.hbm %s2453_s28, 512  ;;  %s1989_s5 = scalar_lea.hbm %s2554_s16, 1024 }
 0xd98   : > { %p1986_p10 = scmp.ne.s32.totalorder %s2453_s28, %s1985_s18  ;;  %p1990_p13 = scmp.lt.u32.totalorder %s2453_s28, %s2554_s16 }
 0xd99   : > { %p1991_p0 = scmp.lt.u32.totalorder %s1989_s5, %s1985_s18  ;;  %p1993_p2 = scmp.lt.u32.totalorder %s1985_s18, %s2453_s28 }
 0xd9a   : > { %p1987_p11 = pnand %p1986_p10, %p2212_p5 }
 0xd9b   : > { %p1992_p1 = por %p1991_p0, %p1990_p13 }
 0xd9c   : > { %p1988_p12 = pneg %p1987_p11 }
 0xd9d   : > { %p1994_p3 = por %p1993_p2, %p1992_p1 }
 0xd9f   : > { %p1995_p4 = pnand %p1994_p3, %p1988_p12 }
 0xda1   : > { %1998 = shalt.err (!%p1995_p4)
}
 0xda2   : > { %s2085_s20 = smov 128   ;;  %s2579_s6 = smov 8   ;;  %v1723_v46 = vld [vmem:[%s2550_s12] ss:$0 sm:$0xff] }
 0xda3   : > { %1847 = dma.vmem_to_hbm [thread:$0]  (%p2212_p5), %s2447_s3, 512, %s2453_s28, %s2425_s4, %s2085_s20, %s2085_s20, %s2579_s6  }
 0xda4   : > { %v1724_v48 = vld [vmem:[%s2551_s13] ss:$0 sm:$0xff]  ;;  %s2580_s7 = sshll.u32 %s2271_s2, 3  ;;  %s2492_s8 = scalar_lea.hbm %s2552_s14, %s1728_s1 }
 0xda5   : > { %s527_s5 = scalar_lea.vmem [#allocation2], %s2580_s7  ;;  %s1501_s29 = scalar_lea.sflag [#allocation3], %s2271_s2 }
 0xda6   : > { %s1524_s3 = sshll.u32 %s527_s5, 4  ;;  %s2086_s6 = smov [#allocation2]   ;;  %s2494_s3 = int_to_ptr.vmem [resolvable:$true] %s1524_s3 }
 0xda7   : > { %s1999_s20 = scalar_lea.vmem %s2494_s3, 128  ;;  %s2003_s25 = sshll.u32 %s2086_s6, 4  ;;  %s2004_s25 = int_to_ptr.vmem [resolvable:$false] %s2003_s25 }
 0xda8   : > { %p2000_p7 = scmp.ne.s32.totalorder %s2494_s3, %s1999_s20  ;;  %s2005_s30 = scalar_lea.vmem %s2004_s25, 256 }
 0xda9   : > { %p2006_p10 = scmp.lt.s32.totalorder %s2494_s3, %s2004_s25  ;;  %p2007_p11 = scmp.lt.s32.totalorder %s2005_s30, %s1999_s20 }
 0xdaa   : > { %p2001_p8 = pnand %p2000_p7, %p2212_p5 }
 0xdab   : > { %p2008_p12 = por %p2007_p11, %p2006_p10 }
 0xdac   : > { %p2002_p9 = pneg %p2001_p8 }
 0xdae   : > { %p2009_p13 = pnand %p2008_p12, %p2002_p9 }
 0xe0a   : > { %v1480_v42 = vpop.xlane.xlu1 %1479 }
 0xe0b   : > { %v1481_v43 = vmul.f32 0.03125, %v1480_v42 }
 0xe0d   : > { %v1482_v44 = vadd.f32 1e-05, %v1481_v43 }
 0xe0f   : > { %1941 = vrsqrt.f32 %v1482_v44 }
 0xe19   : > { %v1942_v45 = vpop.eup %1941 }
 0xe1a   : > { %v1484_v47 = vmul.f32 %v1942_v45, %v2409_v39 }
 0xe1c   : > { %v1491_v49 = vmul.f32 %v1723_v46, %v1484_v47 }
 0xe1e   : > { %v1498_v50 = vadd.f32 %v1724_v48, %v1491_v49 }
 0xe20   : > { %1499 = vst.msk [vmem:[%s527_s5] sm:$0xff] %vm576_vm1, %v1498_v50 }
 0xe21   : > { %2012 = shalt.err (!%p2009_p13)
}
 0xe22   : > { %s2013_s2 = scalar_lea.hbm %s2492_s8, 128  ;;  %s2017_s18 = scalar_lea.hbm %s2552_s14, 256 }
 0xe23   : > { %p2014_p0 = scmp.ne.s32.totalorder %s2492_s8, %s2013_s2  ;;  %p2018_p3 = scmp.lt.u32.totalorder %s2492_s8, %s2552_s14 }
 0xe24   : > { %p2019_p4 = scmp.lt.u32.totalorder %s2017_s18, %s2013_s2  ;;  %p2021_p8 = scmp.lt.u32.totalorder %s2013_s2, %s2492_s8 }
 0xe25   : > { %p2015_p1 = pnand %p2014_p0, %p2212_p5 }
 0xe26   : > { %p2020_p7 = por %p2019_p4, %p2018_p3 }
 0xe27   : > { %p2016_p2 = pneg %p2015_p1 }
 0xe28   : > { %p2022_p9 = por %p2021_p8, %p2020_p7 }
 0xe2a   : > { %p2023_p10 = pnand %p2022_p9, %p2016_p2 }
 0xe2c   : > { %2026 = shalt.err (!%p2023_p10)
}
 0xe2d   : > { %1845 = dma.vmem_to_hbm [thread:$0]  (%p2212_p5), %s2494_s3, 128, %s2492_s8, %s1501_s29  }
 0xe2e PF: > { %p1861_p11 = scmp.ge.s32.totalorder %s2065_s24, 2  ;;  %s1565_s5 = sand.u32 1, %s2053_s21  }
 0xe2f   : > { %s1566_s4 = scalar_lea.sflag [#allocation3], %s1565_s5 }
 0xe30   : > { %p1852_p12 = pnand %p1861_p11, %p2216_p6 }
 0xe32   : > { %2044 = dma.done.wait (!%p1852_p12), %s1566_s4, 128  }
 0xe33   : > { %2046 = vsyncadd (!%p1852_p12), %s1566_s4, 4294967168  ;;  %s2581_s28 = sadd.s32 4294967294, %s2065_s24  }
 0xe34   : > { %s1574_s20 = sand.u32 1, %s2581_s28  }
 0xe35   : > { %s1575_s6 = scalar_lea.sflag [#allocation5], %s1574_s20 }
 0xe36   : > { %2048 = dma.done.wait (!%p1852_p12), %s1575_s6, 640  }
 0xe37   : > { %2050 = vsyncadd (!%p1852_p12), %s1575_s6, 4294966656  ;;  %s2582_s0 = sld [smem:[#allocation9_spill]]  ;;  %p30_p5 = scmp.ge.s32.totalorder %s2197_s27, 4  }
 0xe38   : > { %s2583_s21 = smov %s2057_s22  ;;  %s2584_s22 = smov %s2061_s23 }
 0xe39   : > { %s2586_s24 = smov %s2197_s27  ;;  %32 = sbr.rel (!%p30_p5) target bundleno = 15 (0xf), region = 146 }
 0xe3d   : > { %s2585_s23 = smov %s2582_s0 }
 0xe40   :  { %1589 = vsyncpa [#allocation3], 1 }
 0xe41   :  { %1591 = vsyncpa [#allocation3 + $0x1], 1 }
 0xe42   :  { %1592 = vsyncpa [#allocation5], 1 }
 0xe43   :  { %1594 = vsyncpa [#allocation5 + $0x1], 1 }

</bundles_post_ra>
